<compile_context>
chip_gen: v5e
topology: v5e:2x2
jax: 0.10.0
libtpu: 0.0.40
codegen_flags: <defaults>
</compile_context>

<pallas_src>
import functools

import jax
import jax.numpy as jnp
from jax.experimental import pallas as pl
from jax.experimental.pallas import tpu as pltpu

_EPS = 1e-14     # matches speechbrain.spectral_magnitude eps for power < 1


def _round_up(x, m):
    return ((x + m - 1) // m) * m


def _cdiv(a, b):
    return (a + b - 1) // b


def _stft_mag_loss_kernel(fr_ref, basis_ref, out_ref, *, tm, half, distance_metric):
    """Grid = (B, num_tiles), both axes parallel.

    fr_ref    : (2*tm, W)     rows [0, tm) = y_hat frames, rows [tm, 2*tm) = y frames
    basis_ref : (W, 2*half)   [ win*cos | 0-pad | -win*sin | 0-pad ]  (resident)
    out_ref   : (8, half)     lane-dense per-tile partial distance sum
    """
    # One fused MXU matmul for both waveforms and both (re, im) parts.
    p = jnp.dot(fr_ref[...], basis_ref[...], preferred_element_type=jnp.float32)
    re = p[:, :half]
    im = p[:, half:]
    mag = jnp.sqrt(re * re + im * im + _EPS)            # (2*tm, half)

    diff = mag[:tm, :] - mag[tm:, :]                    # (tm, half)
    # Padded frame rows / padded basis lanes give sqrt(eps) on both sides -> diff == 0,
    # so no validity mask is needed.
    if distance_metric == "l2":
        d = diff * diff
    else:  # 'l1'
        d = jnp.abs(diff)

    # Fold tm rows into an (8, half) lane-dense partial (sublane-aligned static slices).
    folded = d[0:8, :]
    for i in range(1, tm // 8):
        folded = folded + d[8 * i: 8 * (i + 1), :]
    out_ref[...] = folded


def stft_magnitude_loss(y_hat, y, *, n_fft=128, hop_length=64,
                        distance_metric="l2", use_log=False,
                        frames_per_tile=None, use_bf16=None):
    if distance_metric not in ("l1", "l2"):
        raise ValueError("distance_metric must be one of ['l1', 'l2']")

    yh = jnp.squeeze(y_hat, axis=-1).astype(jnp.float32)            # (B, T)
    yy = jnp.squeeze(y, axis=-1).astype(jnp.float32)                # (B, T)
    B, T = yh.shape
    W = n_fft
    hop = hop_length
    K = n_fft // 2 + 1
    if T < W:
        raise ValueError("signal shorter than n_fft")
    M = (T - W) // hop + 1                                          # frames (center=False)

    # bf16 MXU inputs once the matmul is non-negligible (keeps f32 accumulation).
    if use_bf16 is None:
        use_bf16 = n_fft >= 512
    in_dtype = jnp.bfloat16 if use_bf16 else jnp.float32
    itemsize = 2 if use_bf16 else 4

    # Frame-row tile size: big tiles for small n_fft (amortize per-step overhead),
    # capped for large n_fft so per-step footprint stays inside v7x VMEM.
    if frames_per_tile is None:
        if n_fft <= 256:
            frames_per_tile = 512
        elif n_fft <= 768:
            frames_per_tile = 256
        else:
            frames_per_tile = 128
    tm = max(8, min(_round_up(frames_per_tile, 8), _round_up(M, 8)))
    nt = _cdiv(M, tm)
    pad_rows = nt * tm - M

    # Wrapper-side overlapping-frame materialization (pure XLA gather; extra HBM
    # traffic is only ~ (n_fft/hop) x waveform bytes).  Frames are padded with
    # exact zeros and tiled to (B, nt, tm, W); y_hat / y are stacked per tile.
    idx = jnp.arange(M)[:, None] * hop + jnp.arange(W)[None, :]     # (M, W)

    def tiles(x):
        fr = jnp.take(x, idx, axis=1)                               # (B, M, W)
        if pad_rows:
            fr = jnp.pad(fr, ((0, 0), (0, pad_rows), (0, 0)))
        return fr.reshape(B, nt, tm, W).astype(in_dtype)

    stacked = jnp.concatenate([tiles(yh), tiles(yy)], axis=2)       # (B, nt, 2*tm, W)

    # Fused, lane-padded, window-folded DFT basis: [ win*cos | 0 | -win*sin | 0 ].
    half = _round_up(K, 128)
    n = jnp.arange(W, dtype=jnp.float32)
    window = 0.5 * (1.0 - jnp.cos(2.0 * jnp.pi * n / W))            # periodic Hann
    k = jnp.arange(K, dtype=jnp.float32)
    ang = 2.0 * jnp.pi * jnp.outer(n, k) / float(n_fft)
    basis = jnp.zeros((W, 2 * half), jnp.float32)
    basis = basis.at[:, :K].set(window[:, None] * jnp.cos(ang))
    basis = basis.at[:, half:half + K].set(-window[:, None] * jnp.sin(ang))
    basis = basis.astype(in_dtype)

    # The basis block index never changes -> single-buffer it when it is large
    # (v7x VMEM budget); small bases keep the default (harmless) double buffer.
    basis_bytes = W * 2 * half * itemsize
    basis_spec_kwargs = {}
    basis_bufs = 2
    if basis_bytes >= (4 << 20):
        basis_spec_kwargs["pipeline_mode"] = pl.Buffered(1)
        basis_bufs = 1

    # Explicit scoped-VMEM budget: frames block (double-buffered) + resident basis
    # + output block + headroom for the p/mag/diff temporaries.
    frames_block_bytes = 2 * tm * W * itemsize
    out_block_bytes = 8 * half * 4
    tmp_bytes = 3 * (2 * tm) * (2 * half) * 4
    vmem_limit = int(min(max(2 * frames_block_bytes + basis_bufs * basis_bytes
                             + 2 * out_block_bytes + tmp_bytes + (4 << 20),
                             16 << 20),
                         48 << 20))

    kernel = functools.partial(_stft_mag_loss_kernel, tm=tm, half=half,
                               distance_metric=distance_metric)

    partials = pl.pallas_call(
        kernel,
        out_shape=jax.ShapeDtypeStruct((B, nt, 8, half), jnp.float32),
        grid_spec=pltpu.PrefetchScalarGridSpec(
            num_scalar_prefetch=0,
            grid=(B, nt),
            in_specs=[
                pl.BlockSpec((None, None, 2 * tm, W), lambda b, t: (b, t, 0, 0)),
                pl.BlockSpec((W, 2 * half), lambda b, t: (0, 0),   # resident basis
                             **basis_spec_kwargs),
            ],
            out_specs=pl.BlockSpec((None, None, 8, half), lambda b, t: (b, t, 0, 0)),
        ),
        compiler_params=pltpu.CompilerParams(
            dimension_semantics=("parallel", "parallel"),
            vmem_limit_bytes=vmem_limit),
    )(stacked, basis)

    loss = jnp.sum(partials) / jnp.float32(B * M * K)               # mean of L1/MSELoss
    if use_log:
        loss = 10.0 * jnp.log10(loss)
    return jnp.mean(loss)                                           # .mean() on scalar (no-op)


def _reference_loss(y_hat, y, *, n_fft=128, hop_length=64,
                    distance_metric="l2", use_log=False):
    """Pure-JAX reference for correctness checking."""
    yh = jnp.squeeze(y_hat, -1).astype(jnp.float32)
    yy = jnp.squeeze(y, -1).astype(jnp.float32)
    B, T = yh.shape
    W, K = n_fft, n_fft // 2 + 1
    M = (T - W) // hop_length + 1
    idx = jnp.arange(M)[:, None] * hop_length + jnp.arange(W)[None, :]
    n = jnp.arange(W, dtype=jnp.float32)
    win = 0.5 * (1.0 - jnp.cos(2.0 * jnp.pi * n / W))
    k = jnp.arange(K, dtype=jnp.float32)
    ang = 2.0 * jnp.pi * jnp.outer(n, k) / float(n_fft)

    def mag(x):
        fr = x[:, idx] * win                     # (B, M, W)
        re = jnp.einsum("bmw,wk->bmk", fr, jnp.cos(ang))
        im = jnp.einsum("bmw,wk->bmk", fr, -jnp.sin(ang))
        return jnp.sqrt(re * re + im * im + _EPS)

    d = mag(yh) - mag(yy)
    loss = jnp.mean(d * d) if distance_metric == "l2" else jnp.mean(jnp.abs(d))
    if use_log:
        loss = 10.0 * jnp.log10(loss)
    return loss


if __name__ == "__main__":
    key = jax.random.PRNGKey(0)
    k1, k2 = jax.random.split(key)
    B, T = 2, 1024
    y_hat = jax.random.normal(k1, (B, T, 1), dtype=jnp.float32)
    y = jax.random.normal(k2, (B, T, 1), dtype=jnp.float32)

    ok = True
    configs = [
        dict(n_fft=128, hop_length=64, distance_metric="l2", use_log=False),
        dict(n_fft=128, hop_length=64, distance_metric="l1", use_log=False),
        dict(n_fft=128, hop_length=32, distance_metric="l2", use_log=True),
    ]
    for cfg in configs:
        loss = jax.block_until_ready(stft_magnitude_loss(y_hat, y, **cfg))
        ref = _reference_loss(y_hat, y, **cfg)
        if not jnp.allclose(loss, ref, rtol=1e-3, atol=1e-5):
            ok = False
            print(f"MISMATCH {cfg}: kernel={loss} ref={ref}")

    if ok:
        print("KERNEL_OK")
</pallas_src>

<mosaic_0001>
module attributes {stable_mosaic.version = 11 : i64} {
  func.func @_stft_mag_loss_kernel(%arg0: i32, %arg1: i32, %arg2: memref<1x1x32x128xf32, #tpu.memory_space<vmem>>, %arg3: memref<128x256xf32, #tpu.memory_space<vmem>>, %arg4: memref<1x1x8x128xf32, #tpu.memory_space<vmem>>) attributes {dimension_semantics = [#tpu.dimension_semantics<parallel>, #tpu.dimension_semantics<parallel>], iteration_bounds = array<i64: 2, 1>, scalar_prefetch = 0 : i64, scratch_operands = 0 : i64, tpu.core_type = #tpu.core_type<tc>, window_params = [{transform_indices = @transform_0, window_bounds = array<i64: 1, 1, 32, 128>}, {pipeline_mode = #tpu.pipeline_mode<synchronous>, transform_indices = @transform_1, window_bounds = array<i64: 128, 256>}, {transform_indices = @transform_2, window_bounds = array<i64: 1, 1, 8, 128>}]} {
    %c0 = arith.constant 0 : index
    %c0_0 = arith.constant 0 : index
    %c0_1 = arith.constant 0 : index
    %c0_2 = arith.constant 0 : index
    %0 = vector.load %arg2[%c0, %c0_0, %c0_1, %c0_2] : memref<1x1x32x128xf32, #tpu.memory_space<vmem>>, vector<1x1x32x128xf32>
    %1 = vector.shape_cast %0 : vector<1x1x32x128xf32> to vector<32x128xf32>
    %c0_3 = arith.constant 0 : index
    %c0_4 = arith.constant 0 : index
    %2 = vector.load %arg3[%c0_3, %c0_4] : memref<128x256xf32, #tpu.memory_space<vmem>>, vector<128x256xf32>
    %cst = arith.constant dense<0.000000e+00> : vector<32x256xf32>
    %3 = tpu.matmul %1, %2, %cst {dimension_numbers = #tpu.dot_dimension_numbers<[1], [0], [0], [1], [0, 0, 1, 1], [], []>} : vector<32x128xf32>, vector<128x256xf32>, vector<32x256xf32> -> vector<32x256xf32>
    %4 = vector.extract_strided_slice %3 {offsets = [0, 0], sizes = [32, 128], strides = [1, 1]} : vector<32x256xf32> to vector<32x128xf32>
    %5 = vector.extract_strided_slice %3 {offsets = [0, 128], sizes = [32, 128], strides = [1, 1]} : vector<32x256xf32> to vector<32x128xf32>
    %6 = arith.mulf %4, %4 : vector<32x128xf32>
    %7 = arith.mulf %5, %5 : vector<32x128xf32>
    %8 = arith.addf %6, %7 : vector<32x128xf32>
    %cst_5 = arith.constant 9.99999982E-15 : f32
    %9 = vector.broadcast %cst_5 : f32 to vector<32x128xf32>
    %10 = arith.addf %8, %9 : vector<32x128xf32>
    %11 = math.sqrt %10 : vector<32x128xf32>
    %12 = vector.extract_strided_slice %11 {offsets = [0, 0], sizes = [16, 128], strides = [1, 1]} : vector<32x128xf32> to vector<16x128xf32>
    %13 = vector.extract_strided_slice %11 {offsets = [16, 0], sizes = [16, 128], strides = [1, 1]} : vector<32x128xf32> to vector<16x128xf32>
    %14 = arith.subf %12, %13 : vector<16x128xf32>
    %15 = arith.mulf %14, %14 : vector<16x128xf32>
    %16 = vector.extract_strided_slice %15 {offsets = [0, 0], sizes = [8, 128], strides = [1, 1]} : vector<16x128xf32> to vector<8x128xf32>
    %17 = vector.extract_strided_slice %15 {offsets = [8, 0], sizes = [8, 128], strides = [1, 1]} : vector<16x128xf32> to vector<8x128xf32>
    %18 = arith.addf %16, %17 : vector<8x128xf32>
    %c0_6 = arith.constant 0 : index
    %c0_7 = arith.constant 0 : index
    %c0_8 = arith.constant 0 : index
    %c0_9 = arith.constant 0 : index
    %19 = vector.load %arg4[%c0_6, %c0_7, %c0_8, %c0_9] : memref<1x1x8x128xf32, #tpu.memory_space<vmem>>, vector<1x1x8x128xf32>
    %20 = vector.shape_cast %19 : vector<1x1x8x128xf32> to vector<8x128xf32>
    %21 = vector.shape_cast %18 : vector<8x128xf32> to vector<1x1x8x128xf32>
    tpu.vector_store %arg4[%c0_6, %c0_7, %c0_8, %c0_9], %21 {strides = array<i32>} : memref<1x1x8x128xf32, #tpu.memory_space<vmem>>, vector<1x1x8x128xf32>,
    return
  }
  func.func @transform_0(%arg0: i32, %arg1: i32) -> (i32, i32, i32, i32) {
    %c0_i32 = arith.constant 0 : i32
    %c0_i32_0 = arith.constant 0 : i32
    %c0_i32_1 = arith.constant 0 : i32
    return %arg0, %arg1, %c0_i32, %c0_i32_0 : i32, i32, i32, i32
  }
  func.func @transform_1(%arg0: i32, %arg1: i32) -> (i32, i32) {
    %c0_i32 = arith.constant 0 : i32
    %c0_i32_0 = arith.constant 0 : i32
    %c0_i32_1 = arith.constant 0 : i32
    return %c0_i32, %c0_i32_0 : i32, i32
  }
  func.func @transform_2(%arg0: i32, %arg1: i32) -> (i32, i32, i32, i32) {
    %c0_i32 = arith.constant 0 : i32
    %c0_i32_0 = arith.constant 0 : i32
    %c0_i32_1 = arith.constant 0 : i32
    return %arg0, %arg1, %c0_i32, %c0_i32_0 : i32, i32, i32, i32
  }
}

</mosaic_0001>

<bundles_post_ra>
// kernel: tpu_custom_call.1
= control target key start
LH: loop header
LB: loop body
LE: loop exit
PB: predicated region body
PF: predicated region fallthrough
CT: control target
= control target key end

     0   :  { %7 = vsyncpa [#allocation3], 0  ;;  %s939_s0 = inlined_call_operand.hbm [shape: f32[2,1,32,128], index: 0, kind: input, shape index: {}]   ;;  %s940_s1 = inlined_call_operand.hbm [shape: f32[128,256], index: 1, kind: input, shape index: {}]   ;;  %s941_s2 = inlined_call_operand.hbm [shape: f32[2,1,8,128], index: 2, kind: output, shape index: {}]  }
   0x1   :  { %9 = vsyncpa [#allocation3 + $0x1], 0 }
   0x2   :  { %10 = vsyncpa [#allocation6], 0 }
   0x3   :  { %11 = vsyncpa [#allocation4], 0 }
   0x4   :  { %13 = vsyncpa [#allocation4 + $0x1], 0  ;;  %s774_s9 = smov 0   ;;  %s776_s10 = smov 0  }
   0x5   :  { %s778_s11 = smov 0   ;;  %s780_s12 = smov 0  }
   0x6   :  { %s782_s13 = smov 0   ;;  %s784_s14 = smov 0  }
   0x7 LB: > { %s472_s15 = sadd.s32 4294967295, %s752_s14   ;;  %s473_s16 = sadd.s32 4294967294, %s752_s14   ;;  %s752_s14 = sphi %s784_s14, %s19_s14   ;;  %s748_s13 = sphi %s782_s13, %s953_s13   ;;  %s744_s12 = sphi %s780_s12, %s952_s12   ;;  %s740_s11 = sphi %s778_s11, %s951_s11   ;;  %s736_s10 = sphi %s776_s10, %s950_s10   ;;  %s732_s9 = sphi %s774_s9, %s949_s9  }
   0x8   : > { %p53_p0 = scmp.ne.s32.totalorder %s736_s10, %s732_s9  ;;  %p808_p1 = scmp.eq.s32.totalorder %s472_s15, 0 }
   0x9   : > { %p812_p2 = scmp.eq.s32.totalorder %s472_s15, 1  ;;  %p106_p3 = scmp.eq.s32.totalorder %s473_s16, 1 }
   0xa   : > { %p818_p4 = por %p808_p1, %p53_p0  ;;  %p474_p5 = scmp.ge.s32.totalorder %s752_s14, 1 }
   0xb   : > { %p823_p6 = por %p106_p3, %p53_p0  ;;  %p113_p7 = scmp.lt.s32.totalorder %s752_s14, 3 }
   0xc   : > { %s124_s23 = sshll.u32 %s940_s1, 4  ;;  %s754_s25 = smov [#allocation5]   ;;  %s125_s23 = int_to_ptr.hbm [resolvable:$true] %s124_s23 }
   0xd   : > { %p831_p8 = pnand %p474_p5, %p113_p7  ;;  %s126_s26 = sshll.u32 %s754_s25, 4  ;;  %s127_s26 = int_to_ptr.vmem [resolvable:$true] %s126_s26 }
   0xe   : > { %p476_p11 = scmp.ge.s32.totalorder %s752_s14, 2  ;;  %s755_s27 = smov 256  }
   0xf   : > { %p529_p9 = pneg %p831_p8  ;;  %s756_s28 = smov 16  }
  0x10   : > { %s31_s29 = sadd.s32 1, %s748_s13  ;;  %s40_s30 = sadd.s32 1, %s740_s11 }
  0x11   : > { %p530_p10 = pnand %p529_p9, %p808_p1  ;;  %p33_p12 = scmp.ge.s32.totalorder %s31_s29, 2 }
  0x12   : > { %p47_p13 = scmp.ne.s32.totalorder %s740_s11, %s736_s10  ;;  %p48_p0 = scmp.eq.s32.totalorder %s752_s14, 0 }
  0x13   : > { %532 = dma.hbm_to_vmem [thread:$0]  (!%p530_p10), %s125_s23, 4096, %s127_s26, [#allocation6], %s755_s27, %s755_s27, %s756_s28  }
  0x14   : > { %s955_s29 = smov (%p33_p12, %s31_s29), 0  ;;  %p847_p3 = por %p48_p0, %p47_p13 }
  0x15   : > { %p853_p5 = por %p812_p2, %p47_p13  ;;  %s35_s5 = ssub.s32 %s748_s13, %s955_s29 }
  0x16   : > { %p542_p7 = scmp.lt.s32.totalorder %s752_s14, 2  ;;  %p38_p9 = scmp.eq.s32.totalorder %s35_s5, 0 }
  0x17   : > { %s140_s6 = sand.u32 1, %s740_s11   ;;  %s488_s15 = sshll.u32 %s748_s13, 5 }
  0x18   : > { %s477_s7 = sshll.u32 %s140_s6, 5  ;;  %s151_s22 = scalar_lea.hbm %s939_s0, %s488_s15 }
  0x19   : > { %s862_s8 = scalar_select %p38_p9, %s740_s11, %s40_s30  }
  0x1a   : > { %s144_s23 = scalar_lea.vmem [#allocation2], %s477_s7  ;;  %s152_s18 = sshll.u32 %s151_s22, 4  ;;  %s153_s18 = int_to_ptr.hbm [resolvable:$true] %s152_s18 }
  0x1b   : > { %s154_s25 = sshll.u32 %s144_s23, 4  ;;  %p534_p2 = pnand %p542_p7, %p847_p3  ;;  %s155_s25 = int_to_ptr.vmem [resolvable:$true] %s154_s25 }
  0x1c   : > { %s141_s26 = scalar_lea.sflag [#allocation3], %s140_s6  ;;  %s757_s27 = smov 128  }
  0x1d   : > { %s758_s28 = smov 8   ;;  %166 = sbr.rel (%p831_p8) target bundleno = 247 (0xf7), region = 28 }
  0x1e   : > { %536 = dma.hbm_to_vmem [thread:$0]  (!%p534_p2), %s153_s18, 512, %s155_s25, %s141_s26, %s757_s27, %s757_s27, %s758_s28  }
  0x1f   : > { %s873_s30 = sand.u32 (!%p831_p8), 1, %s736_s10  }
  0x20   : > { %s481_s5 = sshll.u32 (!%p831_p8), %s873_s30, 5  ;;  %s169_s7 = scalar_lea.sflag (!%p831_p8), [#allocation3], %s873_s30 }
  0x21   : > { %s877_s15 = scalar_lea.vmem (!%p831_p8), [#allocation2], %s481_s5 }
  0x22   : > { %719 = dma.done.wait (%p818_p4), %s169_s7, 512  }
  0x23   : > { %721 = vsyncadd (%p818_p4), %s169_s7, 4294966784 }
  0x24   : > { %723 = dma.done.wait (%p808_p1), [#allocation6], 4096  }
  0x25   : > { %725 = vsyncadd (%p808_p1), [#allocation6], 4294963200  ;;  %v233_v0 = vld [vmem:[#allocation5 + $0xf0] sm:$0xff]  ;;  %v234_v1 = vld [vmem:[#allocation5 + $0xf8] sm:$0xff]  ;;  %s483_s17 = sshll.u32 %s873_s30, 3  ;;  %s485_s19 = sshll.u32 %s744_s12, 3 }
  0x26   : > { %v231_v2 = vld [vmem:[#allocation5 + $0xe0] sm:$0xff]  ;;  %235 = vmatpush.msra.mxu0 %v233_v0  ;;  %489 = vmatpush.msra.mxu2 %v233_v0  ;;  %v232_v3 = vld [vmem:[#allocation5 + $0xe8] sm:$0xff]  ;;  %v229_v4 = vld [vmem:[#allocation5 + $0xd0] sm:$0xff]  ;;  %s375_s6 = scalar_lea.hbm %s941_s2, %s485_s19  ;;  %s198_s12 = scalar_lea.vmem [#allocation7], %s483_s17 }
  0x27   : > { %264 = vmatpush.msra.mxu1 %v234_v1  ;;  %505 = vmatpush.msra.mxu3 %v234_v1  ;;  %v230_v5 = vld [vmem:[#allocation5 + $0xd8] sm:$0xff]  ;;  %v227_v6 = vld [vmem:[#allocation5 + $0xc0] sm:$0xff]  ;;  %v228_v7 = vld [vmem:[#allocation5 + $0xc8] sm:$0xff]  ;;  %s377_s16 = sshll.u32 %s198_s12, 4  ;;  %s379_s21 = sshll.u32 %s375_s6, 4  ;;  %s378_s16 = int_to_ptr.vmem [resolvable:$true] %s377_s16  ;;  %s380_s21 = int_to_ptr.hbm [resolvable:$true] %s379_s21 }
  0x28   : > { %236 = vmatpush.msra.mxu0 %v231_v2  ;;  %490 = vmatpush.msra.mxu2 %v231_v2  ;;  %v225_v8 = vld [vmem:[#allocation5 + $0xb0] sm:$0xff]  ;;  %v226_v9 = vld [vmem:[#allocation5 + $0xb8] sm:$0xff]  ;;  %v223_v10 = vld [vmem:[#allocation5 + $0xa0] sm:$0xff]  ;;  %s364_s22 = scalar_lea.sflag [#allocation4], %s873_s30  ;;  %s680_s23 = sshra.s32 %s380_s21, 4  ;;  %s681_s23 = int_to_ptr.hbm [resolvable:$true] %s680_s23 }
  0x29   : > { %265 = vmatpush.msra.mxu1 %v232_v3  ;;  %506 = vmatpush.msra.mxu3 %v232_v3  ;;  %v224_v11 = vld [vmem:[#allocation5 + $0xa8] sm:$0xff]  ;;  %v221_v12 = vld [vmem:[#allocation5 + $0x90] sm:$0xff]  ;;  %v222_v13 = vld [vmem:[#allocation5 + $0x98] sm:$0xff]  ;;  %s682_s25 = scalar_lea.hbm %s681_s23, 8  ;;  %s686_s27 = scalar_lea.hbm %s941_s2, 16 }
  0x2a   : > { %237 = vmatpush.msra.mxu0 %v229_v4  ;;  %491 = vmatpush.msra.mxu2 %v229_v4  ;;  %v219_v14 = vld [vmem:[#allocation5 + $0x80] sm:$0xff]  ;;  %v220_v15 = vld [vmem:[#allocation5 + $0x88] sm:$0xff]  ;;  %v217_v16 = vld [vmem:[#allocation5 + $0x70] sm:$0xff]  ;;  %p683_p1 = scmp.ne.s32.totalorder %s681_s23, %s682_s25  ;;  %p687_p10 = scmp.lt.s32.totalorder %s681_s23, %s941_s2 }
  0x2b   : > { %266 = vmatpush.msra.mxu1 %v230_v5  ;;  %507 = vmatpush.msra.mxu3 %v230_v5  ;;  %v218_v17 = vld [vmem:[#allocation5 + $0x78] sm:$0xff]  ;;  %v215_v18 = vld [vmem:[#allocation5 + $0x60] sm:$0xff]  ;;  %v216_v19 = vld [vmem:[#allocation5 + $0x68] sm:$0xff]  ;;  %p688_p12 = scmp.lt.s32.totalorder %s686_s27, %s682_s25 }
  0x2c   : > { %238 = vmatpush.msra.mxu0 %v227_v6  ;;  %492 = vmatpush.msra.mxu2 %v227_v6  ;;  %v213_v20 = vld [vmem:[#allocation5 + $0x50] sm:$0xff]  ;;  %v214_v21 = vld [vmem:[#allocation5 + $0x58] sm:$0xff]  ;;  %v211_v22 = vld [vmem:[#allocation5 + $0x40] sm:$0xff]  ;;  %p684_p4 = pnand %p683_p1, %p853_p5 }
  0x2d   : > { %267 = vmatpush.msra.mxu1 %v228_v7  ;;  %508 = vmatpush.msra.mxu3 %v228_v7  ;;  %v212_v23 = vld [vmem:[#allocation5 + $0x48] sm:$0xff]  ;;  %v209_v24 = vld [vmem:[#allocation5 + $0x30] sm:$0xff]  ;;  %v210_v25 = vld [vmem:[#allocation5 + $0x38] sm:$0xff]  ;;  %p689_p13 = por %p688_p12, %p687_p10 }
  0x2e   : > { %239 = vmatpush.msra.mxu0 %v225_v8  ;;  %493 = vmatpush.msra.mxu2 %v225_v8  ;;  %v207_v26 = vld [vmem:[#allocation5 + $0x20] sm:$0xff]  ;;  %v208_v27 = vld [vmem:[#allocation5 + $0x28] sm:$0xff]  ;;  %v205_v28 = vld [vmem:[#allocation5 + $0x10] sm:$0xff]  ;;  %p685_p8 = pneg %p684_p4 }
  0x2f   : > { %268 = vmatpush.msra.mxu1 %v226_v9  ;;  %509 = vmatpush.msra.mxu3 %v226_v9  ;;  %v206_v29 = vld [vmem:[#allocation5 + $0x18] sm:$0xff]  ;;  %v203_v30 = vld [vmem:[#allocation5] sm:$0xff]  ;;  %v204_v31 = vld [vmem:[#allocation5 + $0x8] sm:$0xff] }
  0x30   : > { %240 = vmatpush.msra.mxu0 %v223_v10  ;;  %494 = vmatpush.msra.mxu2 %v223_v10  ;;  %v199_v32 = vld [vmem:[%s877_s15] sm:$0xff]  ;;  %v201_v33 = vld [vmem:[%s877_s15 + $0x10] sm:$0xff]  ;;  %v200_v34 = vld [vmem:[%s877_s15 + $0x8] sm:$0xff]  ;;  %p690_p0 = pnand %p689_p13, %p685_p8 }
  0x31   : > { %269 = vmatpush.msra.mxu1 %v224_v11  ;;  %510 = vmatpush.msra.mxu3 %v224_v11  ;;  %v202_v35 = vld [vmem:[%s877_s15 + $0x18] sm:$0xff] }
  0x32   : > { %241 = vmatpush.msra.mxu0 %v221_v12  ;;  %495 = vmatpush.msra.mxu2 %v221_v12 }
  0x33   : > { %270 = vmatpush.msra.mxu1 %v222_v13  ;;  %511 = vmatpush.msra.mxu3 %v222_v13 }
  0x34   : > { %242 = vmatpush.msra.mxu0 %v219_v14  ;;  %496 = vmatpush.msra.mxu2 %v219_v14 }
  0x35   : > { %271 = vmatpush.msra.mxu1 %v220_v15  ;;  %512 = vmatpush.msra.mxu3 %v220_v15 }
  0x36   : > { %243 = vmatpush.msra.mxu0 %v217_v16  ;;  %497 = vmatpush.msra.mxu2 %v217_v16 }
  0x37   : > { %272 = vmatpush.msra.mxu1 %v218_v17  ;;  %513 = vmatpush.msra.mxu3 %v218_v17 }
  0x38   : > { %244 = vmatpush.msra.mxu0 %v215_v18  ;;  %498 = vmatpush.msra.mxu2 %v215_v18 }
  0x39   : > { %273 = vmatpush.msra.mxu1 %v216_v19  ;;  %514 = vmatpush.msra.mxu3 %v216_v19 }
  0x3a   : > { %245 = vmatpush.msra.mxu0 %v213_v20  ;;  %499 = vmatpush.msra.mxu2 %v213_v20 }
  0x3b   : > { %274 = vmatpush.msra.mxu1 %v214_v21  ;;  %515 = vmatpush.msra.mxu3 %v214_v21 }
  0x3c   : > { %246 = vmatpush.msra.mxu0 %v211_v22  ;;  %500 = vmatpush.msra.mxu2 %v211_v22 }
  0x3d   : > { %275 = vmatpush.msra.mxu1 %v212_v23  ;;  %516 = vmatpush.msra.mxu3 %v212_v23 }
  0x3e   : > { %247 = vmatpush.msra.mxu0 %v209_v24  ;;  %501 = vmatpush.msra.mxu2 %v209_v24 }
  0x3f   : > { %276 = vmatpush.msra.mxu1 %v210_v25  ;;  %517 = vmatpush.msra.mxu3 %v210_v25 }
  0x40   : > { %248 = vmatpush.msra.mxu0 %v207_v26  ;;  %502 = vmatpush.msra.mxu2 %v207_v26 }
  0x41   : > { %277 = vmatpush.msra.mxu1 %v208_v27  ;;  %518 = vmatpush.msra.mxu3 %v208_v27 }
  0x42   : > { %249 = vmatpush.msra.mxu0 %v205_v28  ;;  %503 = vmatpush.msra.mxu2 %v205_v28 }
  0x43   : > { %278 = vmatpush.msra.mxu1 %v206_v29  ;;  %519 = vmatpush.msra.mxu3 %v206_v29 }
  0x44   : > { %250 = vmatpush.msra.mxu0 %v203_v30  ;;  %504 = vmatpush.msra.mxu2 %v203_v30 }
  0x45   : > { %279 = vmatpush.msra.mxu1 %v204_v31  ;;  %520 = vmatpush.msra.mxu3 %v204_v31 }
  0x46   : > { %251 = vmatmul.f32.vlgmr.msra.gmra.mxu0 %v199_v32  ;;  %257 = vmatmul.f32.vlgmr.msra.gmra.mxu2 %v201_v33 }
  0x47   : > { %280 = vmatmul.f32.vlgmr.msra.gmra.mxu1 %v199_v32  ;;  %286 = vmatmul.f32.vlgmr.msra.gmra.mxu3 %v201_v33 }
  0x4e   : > { %254 = vmatmul.f32.gmra.mxu0 %v200_v34  ;;  %260 = vmatmul.f32.gmra.mxu2 %v202_v35 }
  0x4f   : > { %283 = vmatmul.f32.gmra.mxu1 %v200_v34  ;;  %289 = vmatmul.f32.gmra.mxu3 %v202_v35 }
  0xc3   : > { %v252_v36 = vpop.f32.mrf.mxu0 }
  0xc4   : > { %v293_v37 = vmul.f32 %v252_v36, %v252_v36  ;;  %v281_v38 = vpop.f32.mrf.mxu1 }
  0xc5   : > { %v297_v39 = vmul.f32 %v281_v38, %v281_v38 }
  0xc7   : > { %v301_v40 = vadd.f32 %v297_v39, %v293_v37 }
  0xc9   : > { %v891_v41 = vadd.f32 1e-14, %v301_v40  ;;  %v258_v42 = vpop.f32.mrf.mxu2 }
  0xca   : > { %v295_v43 = vmul.f32 %v258_v42, %v258_v42  ;;  %v287_v44 = vpop.f32.mrf.mxu3 }
  0xcb   : > { %598 = vrsqrt.f32 %v891_v41  ;;  %v299_v45 = vmul.f32 %v287_v44, %v287_v44  ;;  %v255_v46 = vpop.f32.mrf.mxu0  ;;  %vm316_vm1 = vcmp.eq.f32.partialorder %v891_v41, inf  ;;  %v319_v26 = vand.u32 2147483648, %v891_v41 }
  0xcc   : > { %v294_v47 = vmul.f32 %v255_v46, %v255_v46  ;;  %v284_v48 = vpop.f32.mrf.mxu1  ;;  %vm318_vm4 = vcmp.eq.f32.partialorder %v891_v41, 0.0 }
  0xcd   : > { %v303_v49 = vadd.f32 %v299_v45, %v295_v43  ;;  %v298_v50 = vmul.f32 %v284_v48, %v284_v48 }
  0xcf   : > { %v307_v51 = vadd.f32 1e-14, %v303_v49  ;;  %v302_v52 = vadd.f32 %v298_v50, %v294_v47 }
  0xd1   : > { %v599_v53 = vpop.eup %598  ;;  %600 = vrsqrt.f32 %v307_v51  ;;  %v306_v54 = vadd.f32 1e-14, %v302_v52  ;;  %v261_v55 = vpop.f32.mrf.mxu2  ;;  %vm340_vm0 = vcmp.eq.f32.partialorder %v307_v51, inf  ;;  %v343_v23 = vand.u32 2147483648, %v307_v51 }
  0xd2   : > { %v296_v56 = vmul.f32 %v261_v55, %v261_v55  ;;  %v290_v57 = vpop.f32.mrf.mxu3  ;;  %v310_v58 = vmul.f32 %v599_v53, %v891_v41  ;;  %vm342_vm2 = vcmp.eq.f32.partialorder %v307_v51, 0.0 }
  0xd3   : > { %602 = vrsqrt.f32 %v306_v54  ;;  %v300_v59 = vmul.f32 %v290_v57, %v290_v57  ;;  %vm328_vm3 = vcmp.eq.f32.partialorder %v306_v54, inf  ;;  %v331_v31 = vand.u32 2147483648, %v306_v54 }
  0xd4   : > { %v311_v60 = vmul.f32 %v599_v53, %v310_v58  ;;  %vm330_vm6 = vcmp.eq.f32.partialorder %v306_v54, 0.0 }
  0xd5   : > { %v304_v61 = vadd.f32 %v300_v59, %v296_v56 }
  0xd6   : > { %v312_v0 = vmul.f32 0.5, %v311_v60 }
  0xd7   : > { %v601_v62 = vpop.eup %600  ;;  %v308_v63 = vadd.f32 1e-14, %v304_v61 }
  0xd8   : > { %v334_v1 = vmul.f32 %v601_v62, %v307_v51  ;;  %v313_v5 = vsub.f32 1.5, %v312_v0 }
  0xd9   : > { %v603_v2 = vpop.eup %602  ;;  %604 = vrsqrt.f32 %v308_v63  ;;  %vm352_vm5 = vcmp.eq.f32.partialorder %v308_v63, inf  ;;  %v355_v32 = vand.u32 2147483648, %v308_v63  ;;  %vm354_vm7 = vcmp.eq.f32.partialorder %v308_v63, 0.0 }
  0xda   : > { %v322_v3 = vmul.f32 %v603_v2, %v306_v54  ;;  %v335_v4 = vmul.f32 %v601_v62, %v334_v1  ;;  %v314_v12 = vmul.f32 %v599_v53, %v313_v5 }
  0xdc   : > { %v323_v6 = vmul.f32 %v603_v2, %v322_v3  ;;  %v336_v7 = vmul.f32 0.5, %v335_v4  ;;  %v315_v18 = vmul.f32 %v314_v12, %v891_v41 }
  0xde   : > { %v324_v8 = vmul.f32 0.5, %v323_v6  ;;  %v337_v9 = vsub.f32 1.5, %v336_v7  ;;  %v317_v24 = vsel %vm316_vm1, %v891_v41, %v315_v18 }
  0xdf   : > { %v605_v10 = vpop.eup %604  ;;  %v320_v30 = vsel %vm318_vm4, %v319_v26, %v317_v24 }
  0xe0   : > { %v346_v11 = vmul.f32 %v605_v10, %v308_v63  ;;  %v325_v13 = vsub.f32 1.5, %v324_v8  ;;  %v338_v14 = vmul.f32 %v601_v62, %v337_v9 }
  0xe2   : > { %v326_v15 = vmul.f32 %v603_v2, %v325_v13  ;;  %v339_v16 = vmul.f32 %v338_v14, %v307_v51  ;;  %v347_v17 = vmul.f32 %v605_v10, %v346_v11 }
  0xe4   : > { %v348_v19 = vmul.f32 0.5, %v347_v17  ;;  %v327_v20 = vmul.f32 %v326_v15, %v306_v54  ;;  %v341_v21 = vsel %vm340_vm0, %v307_v51, %v339_v16 }
  0xe5   : > { %v344_v27 = vsel %vm342_vm2, %v343_v23, %v341_v21 }
  0xe6   : > { %v349_v22 = vsub.f32 1.5, %v348_v19  ;;  %v329_v28 = vsel %vm328_vm3, %v306_v54, %v327_v20  ;;  %v357_v34 = vsub.f32 %v320_v30, %v344_v27 }
  0xe7   : > { %v332_v35 = vsel %vm330_vm6, %v331_v31, %v329_v28 }
  0xe8   : > { %v350_v25 = vmul.f32 %v605_v10, %v349_v22  ;;  %v359_v38 = vmul.f32 %v357_v34, %v357_v34 }
  0xea   : > { %v351_v29 = vmul.f32 %v350_v25, %v308_v63 }
  0xec   : > { %v353_v33 = vsel %vm352_vm5, %v308_v63, %v351_v29 }
  0xed   : > { %v356_v36 = vsel %vm354_vm7, %v355_v32, %v353_v33 }
  0xee   : > { %v358_v37 = vsub.f32 %v332_v35, %v356_v36 }
  0xf0   : > { %v360_v39 = vmul.f32 %v358_v37, %v358_v37 }
  0xf2   : > { %v361_v40 = vadd.f32 %v360_v39, %v359_v38 }
  0xf4   : > { %362 = vst [vmem:[%s198_s12] sm:$0xff] %v361_v40 }
  0xf5   : > { %693 = shalt.err (!%p690_p0)
}
  0xf6   : > { %527 = dma.vmem_to_hbm [thread:$0]  (%p853_p5), %s378_s16, 128, %s380_s21, %s364_s22  }
  0xf7 PF: > { %s391_s30 = sand.u32 1, %s732_s9   ;;  %p538_p3 = pnand %p476_p11, %p823_p6 }
  0xf8   : > { %s392_s7 = scalar_lea.sflag [#allocation4], %s391_s30 }
  0xf9   : > { %p539_p7 = pneg %p538_p3 }
  0xfb   : > { %727 = dma.done.wait (%p539_p7), %s392_s7, 128  }
  0xfc   : > { %729 = vsyncadd (%p539_p7), %s392_s7, 4294967168  ;;  %s19_s14 = sadd.s32 1, %s752_s14   ;;  %s949_s9 = smov %s736_s10 }
  0xfd   : > { %p16_p9 = scmp.ge.s32.totalorder %s19_s14, 4   ;;  %s950_s10 = smov %s740_s11 }
  0xfe   : > { %s951_s11 = smov %s862_s8  ;;  %s952_s12 = smov %s748_s13 }
  0xff   : > { %s953_s13 = smov %s955_s29  ;;  %18 = sbr.rel (!%p16_p9) target bundleno = 7 (0x7), region = 77 }
 0x104   :  { %398 = vsyncpa [#allocation3], 1 }
 0x105   :  { %400 = vsyncpa [#allocation3 + $0x1], 1 }
 0x106   :  { %401 = vsyncpa [#allocation6], 1 }
 0x107   :  { %402 = vsyncpa [#allocation4], 1 }
 0x108   :  { %404 = vsyncpa [#allocation4 + $0x1], 1 }

</bundles_post_ra>
